<compile_context>
chip_gen: v7x
topology: tpu7x:2x2x1
jax: 0.10.0
libtpu: 0.0.40
codegen_flags: <defaults>
</compile_context>

<pallas_src>
import functools

import jax
import jax.numpy as jnp
from jax.experimental import pallas as pl
from jax.experimental.pallas import tpu as pltpu


def _fix_laplacian_kernel(n_nodes, rows_per_block, L_ref, out_ref):
    """out_strip = -L_strip - N on the global diagonal (strip = (rows_per_block, N))."""
    row_off = pl.program_id(0) * rows_per_block
    L = L_ref[...]
    r, c = L.shape
    # Global row/col indices of every element in this strip.
    rows = jax.lax.broadcasted_iota(jnp.int32, (r, c), 0) + row_off
    cols = jax.lax.broadcasted_iota(jnp.int32, (r, c), 1)
    # Masked-constant shift: no full-tile f32 temporary, no operand duplication.
    # (For dtypes narrower than f32 and N large enough to round, compute in f32 upstream.)
    shift = jnp.where(rows == cols,
                      jnp.asarray(n_nodes, L.dtype),
                      jnp.zeros((), L.dtype))
    out_ref[...] = -L - shift


def _vmem_budget():
    """(block_budget_bytes, vmem_limit_bytes), sized per TPU generation.

    Default is safe for v7x (64 MiB physical VMEM): ~8 MiB strips, 4x double-buffered
    ~= 32 MiB, under a 48 MiB scoped limit.  v5e/v6e (128 MiB physical) get ~16 MiB
    strips under a 96 MiB limit (also lifts v5e's 16 MiB scoped default).
    """
    block_budget = 8 * 1024 * 1024
    vmem_limit = 48 * 1024 * 1024
    try:
        kind = jax.devices()[0].device_kind.lower()
        if ("v5" in kind) or ("v6" in kind):
            block_budget = 16 * 1024 * 1024
            vmem_limit = 96 * 1024 * 1024
    except Exception:
        pass
    return block_budget, vmem_limit


def _pick_rows_per_block(n, itemsize, block_budget_bytes):
    """Rows per contiguous strip: multiple of 8, strip <= budget, never exceeds N."""
    if n * n * itemsize <= block_budget_bytes:
        return n  # whole matrix in one block (small N); full-dim shapes are always legal
    row_bytes = n * itemsize
    rows = (block_budget_bytes // row_bytes) // 8 * 8
    rows = max(8, rows)          # at worst one 8-row strip (still tiny vs VMEM for sane N)
    rows = min(rows, n)
    return int(rows)


def fix_laplacian(edge_attr, x):
    """Pallas equivalent of GNNStack._fix_laplacian, returned lane-dense as (N, N).

    (PyTorch returns torch.unsqueeze(torch.ravel(L_), 1); that (N*N, 1) shape is
    lane-sparse on TPU (128x padding) and the value is discarded by forward(), so the
    unsqueeze is left to the framework boundary if a consumer ever needs it.)
    """
    n = x.shape[0]
    f_e = edge_attr.shape[1]
    assert edge_attr.shape[0] == n * n, "edge_attr must hold a flattened N x N Laplacian"

    if f_e == 1:
        # Pure metadata reshape: no extra HBM pass before the kernel.
        L = edge_attr.reshape(n, n)
    else:
        # TODO(synk): for small F_e, stream full (rows, N, F_e) strips contiguously and
        # select channel 0 in-kernel (avoids both this extra XLA pass and strided DMA).
        L = edge_attr[:, 0].reshape(n, n)

    itemsize = jnp.dtype(L.dtype).itemsize
    block_budget, vmem_limit = _vmem_budget()
    rows_per_block = _pick_rows_per_block(n, itemsize, block_budget)
    grid = (pl.cdiv(n, rows_per_block),)

    L_fixed = pl.pallas_call(
        functools.partial(_fix_laplacian_kernel, n, rows_per_block),
        out_shape=jax.ShapeDtypeStruct((n, n), L.dtype),
        grid=grid,
        # Contiguous row strips: one dense HBM region per DMA, lane-dense stores.
        in_specs=[pl.BlockSpec((rows_per_block, n), lambda i: (i, 0))],
        out_specs=pl.BlockSpec((rows_per_block, n), lambda i: (i, 0)),
        compiler_params=pltpu.CompilerParams(
            # v7x has 2 TensorCores; parallel semantics shard the strip axis across them.
            dimension_semantics=("parallel",),
            vmem_limit_bytes=vmem_limit,
        ),
        # Bandwidth-bound elementwise op: read N^2 + write N^2, ~2 flops/element.
        cost_estimate=pl.CostEstimate(
            flops=2 * n * n, transcendentals=0, bytes_accessed=2 * n * n * itemsize
        ),
    )(L)
    return L_fixed


def gnnstack_init_params(key, dim, K, num_layers, dtype=jnp.float32):
    """Deterministic ChebConv parameters (shapes match nn.ChebConv(dim, dim, K)).

    Created in __init__ but never used by forward(); kept for fidelity.
    """
    params = []
    for _ in range(num_layers):
        key, kw, kb = jax.random.split(key, 3)
        w = jax.random.normal(kw, (K, dim, dim), dtype=dtype) * 0.1
        b = jax.random.normal(kb, (dim,), dtype=dtype) * 0.1
        params.append({"weight": w, "bias": b})
    return params


def gnnstack_forward(params, x, edge_index, edge_attr, batch):
    """Semantics of GNNStack.forward: compute fixed Laplacian (discarded), return x."""
    _ = fix_laplacian(edge_attr, x)  # computed via the Pallas kernel, then dropped (as in torch)
    return x


if __name__ == "__main__":
    key = jax.random.PRNGKey(0)

    # Small shapes consistent with the module: N nodes with `dim` features each,
    # dense N x N Laplacian stored as flattened edge attributes (F_e = 1).
    N = 16
    dim = 4
    K = 3
    num_layers = 2

    k_x, k_e, k_p = jax.random.split(key, 3)
    x = jax.random.normal(k_x, (N, dim), dtype=jnp.float32)
    edge_attr = jax.random.normal(k_e, (N * N, 1), dtype=jnp.float32)
    # dense edge_index (all pairs), unused by forward but part of the data tuple
    rows = jnp.repeat(jnp.arange(N, dtype=jnp.int32), N)
    cols = jnp.tile(jnp.arange(N, dtype=jnp.int32), N)
    edge_index = jnp.stack([rows, cols], axis=0)
    batch = jnp.zeros((N,), dtype=jnp.int32)

    params = gnnstack_init_params(k_p, dim, K, num_layers)

    # Forward pass (x must come back unchanged).
    out_x = jax.block_until_ready(gnnstack_forward(params, x, edge_index, edge_attr, batch))

    # Check the Pallas-computed Laplacian adjustment against a pure-JAX reference.
    L_fixed = jax.block_until_ready(fix_laplacian(edge_attr, x))
    L_in = edge_attr[:, 0].reshape(N, N)
    ref = -L_in - jnp.float32(N) * jnp.eye(N, dtype=jnp.float32)
    assert jnp.allclose(L_fixed, ref, atol=1e-6), "laplacian kernel mismatch"
    assert jnp.array_equal(out_x, x), "forward must return x unchanged"

    # Also exercise a larger, multi-strip, non-divisible N to cover the cdiv/masked path.
    N2 = 520  # not a multiple of typical strip sizes -> partial last block
    k_e2 = jax.random.PRNGKey(1)
    edge_attr2 = jax.random.normal(k_e2, (N2 * N2, 1), dtype=jnp.float32)
    x2 = jnp.zeros((N2, dim), dtype=jnp.float32)
    L_fixed2 = jax.block_until_ready(fix_laplacian(edge_attr2, x2))
    ref2 = -edge_attr2[:, 0].reshape(N2, N2) - jnp.float32(N2) * jnp.eye(N2, dtype=jnp.float32)
    assert jnp.allclose(L_fixed2, ref2, atol=1e-6), "laplacian kernel mismatch (ragged N)"

    print("KERNEL_OK")
</pallas_src>

<mosaic_0001>
module attributes {stable_mosaic.version = 11 : i64} {
  func.func @_fix_laplacian_kernel(%arg0: i32, %arg1: memref<16x16xf32, #tpu.memory_space<vmem>>, %arg2: memref<16x16xf32, #tpu.memory_space<vmem>>) attributes {dimension_semantics = [#tpu.dimension_semantics<parallel>], iteration_bounds = array<i64: 1>, scalar_prefetch = 0 : i64, scratch_operands = 0 : i64, tpu.core_type = #tpu.core_type<tc>, window_params = [{transform_indices = @transform_0, window_bounds = array<i64: 16, 16>}, {transform_indices = @transform_1, window_bounds = array<i64: 16, 16>}]} {
    %c16_i32 = arith.constant 16 : i32
    %0 = arith.muli %arg0, %c16_i32 : i32
    %c0 = arith.constant 0 : index
    %c0_0 = arith.constant 0 : index
    %1 = vector.load %arg1[%c0, %c0_0] : memref<16x16xf32, #tpu.memory_space<vmem>>, vector<16x16xf32>
    %2 = tpu.iota {dimensions = array<i32: 0>} : vector<16x16xi32>
    %3 = vector.broadcast %0 : i32 to vector<16x16xi32>
    %4 = arith.addi %2, %3 : vector<16x16xi32>
    %5 = tpu.iota {dimensions = array<i32: 1>} : vector<16x16xi32>
    %6 = arith.cmpi eq, %4, %5 : vector<16x16xi32>
    %cst = arith.constant 1.600000e+01 : f32
    %cst_1 = arith.constant 0.000000e+00 : f32
    %7 = vector.broadcast %cst : f32 to vector<16x16xf32>
    %8 = vector.broadcast %cst_1 : f32 to vector<16x16xf32>
    %9 = arith.select %6, %7, %8 : vector<16x16xi1>, vector<16x16xf32>
    %cst_2 = arith.constant 0.000000e+00 : f32
    %10 = vector.broadcast %cst_2 : f32 to vector<16x16xf32>
    %11 = arith.subf %10, %1 : vector<16x16xf32>
    %12 = arith.subf %11, %9 : vector<16x16xf32>
    %c0_3 = arith.constant 0 : index
    %c0_4 = arith.constant 0 : index
    %13 = vector.load %arg2[%c0_3, %c0_4] : memref<16x16xf32, #tpu.memory_space<vmem>>, vector<16x16xf32>
    tpu.vector_store %arg2[%c0_3, %c0_4], %12 {strides = array<i32>} : memref<16x16xf32, #tpu.memory_space<vmem>>, vector<16x16xf32>,
    return
  }
  func.func @transform_0(%arg0: i32) -> (i32, i32) {
    %c0_i32 = arith.constant 0 : i32
    %c0_i32_0 = arith.constant 0 : i32
    return %arg0, %c0_i32 : i32, i32
  }
  func.func @transform_1(%arg0: i32) -> (i32, i32) {
    %c0_i32 = arith.constant 0 : i32
    %c0_i32_0 = arith.constant 0 : i32
    return %arg0, %c0_i32 : i32, i32
  }
}

</mosaic_0001>

<bundles_post_ra>
// kernel: tpu_custom_call.1
= control target key start
LH: loop header
LB: loop body
LE: loop exit
PB: predicated region body
PF: predicated region fallthrough
CT: control target
= control target key end

     0   :  { %6 = vsyncpa [#allocation3], 0  ;;  %s160_s0 = inlined_call_operand.hbm [shape: f32[16,16], index: 0, kind: input, shape index: {}]   ;;  %s161_s1 = inlined_call_operand.hbm [shape: f32[16,16], index: 1, kind: output, shape index: {}]  }
   0x1   :  { %7 = vsyncpa [#allocation4], 0  ;;  %s115_s6 = smov [#allocation2]   ;;  %s67_s10 = scalar_lea.hbm %s160_s0, 256 }
   0x2   :  { %s13_s7 = sshll.u32 %s115_s6, 4  ;;  %p68_p0 = scmp.ne.s32.totalorder %s160_s0, %s67_s10  ;;  %s14_s7 = int_to_ptr.vmem [resolvable:$true] %s13_s7 }
   0x3   :  { %p71_p1 = scmp.lt.u32.totalorder %s67_s10, %s160_s0 }
   0x5   :  { %p73_p2 = pnand %p71_p1, %p68_p0 }
   0x7   :  { %76 = shalt.err (!%p73_p2)
}
   0x8   :  { %s77_s15 = scalar_lea.vmem %s14_s7, 256  ;;  %p82_p4 = scmp.lt.s32.totalorder %s14_s7, %s14_s7 }
   0x9   :  { %p78_p3 = scmp.ne.s32.totalorder %s14_s7, %s77_s15  ;;  %p83_p5 = scmp.lt.s32.totalorder %s77_s15, %s77_s15 }
   0xb   :  { %p84_p6 = por %p83_p5, %p82_p4 }
   0xd   :  { %p85_p7 = pnand %p84_p6, %p78_p3 }
   0xf   :  { %88 = shalt.err (!%p85_p7)
}
  0x10   :  { %s116_s16 = smov 128   ;;  %s117_s17 = smov 8  }
  0x11   :  { %19 = dma.hbm_to_vmem [thread:$0]  %s160_s0, 256, %s14_s7, [#allocation3], %s116_s16, %s116_s16, %s117_s17  }
  0x12   :  { %111 = dma.done.wait [#allocation3], 256  }
  0x13   :  { %112 = vsyncadd [#allocation3], 4294967040  ;;  %v26_v0 = vlaneseq  ;;  %v24_v4 = vld [vmem:[#allocation2] sm:$0xff]  ;;  %v118_v5 = vmov 0.0   ;;  %v25_v7 = vld [vmem:[#allocation2 + $0x8] sm:$0xff]  ;;  %s119_s20 = smov [#allocation5]  }
  0x14   :  { %s50_s21 = sshll.u32 %s119_s20, 4  ;;  %v38_v9 = vsub.f32 0.0, %v24_v4  ;;  %v39_v10 = vsub.f32 0.0, %v25_v7  ;;  %vm42_vm2 = vcmask 130048   ;;  %s51_s21 = int_to_ptr.vmem [resolvable:$true] %s50_s21 }
  0x15   :  { %v27_v1 = vshrl.u32 %v26_v0, 7  ;;  %v33_v2 = vand.u32 127, %v26_v0  ;;  %s89_s0 = scalar_lea.vmem %s51_s21, 256  ;;  %p94_p9 = scmp.lt.s32.totalorder %s51_s21, %s51_s21 }
  0x16   :  { %p90_p8 = scmp.ne.s32.totalorder %s51_s21, %s89_s0  ;;  %p95_p10 = scmp.lt.s32.totalorder %s89_s0, %s89_s0 }
  0x17   :  { %vm34_vm0 = vcmp.eq.s32.totalorder %v27_v1, %v33_v2  ;;  %v28_v3 = vadd.s32 8, %v27_v1 }
  0x18   :  { %v36_v6 = vsel %vm34_vm0, 16.0, %v118_v5  ;;  %p96_p11 = por %p95_p10, %p94_p9 }
  0x19   :  { %vm35_vm1 = vcmp.eq.s32.totalorder %v28_v3, %v33_v2  ;;  %v40_v11 = vsub.f32 %v38_v9, %v36_v6 }
  0x1a   :  { %v37_v8 = vsel %vm35_vm1, 16.0, %v118_v5  ;;  %p97_p12 = pnand %p96_p11, %p90_p8 }
  0x1b   :  { %v41_v12 = vsub.f32 %v39_v10, %v37_v8  ;;  %43 = vst.msk [vmem:[#allocation5] sm:$0xff] %vm42_vm2, %v40_v11 }
  0x1d   :  { %44 = vst.msk [vmem:[#allocation5 + $0x8] sm:$0xff] %vm42_vm2, %v41_v12 }
  0x1e   :  { %100 = shalt.err (!%p97_p12)
}
  0x1f   :  { %s101_s24 = scalar_lea.hbm %s161_s1, 256 }
  0x20   :  { %p102_p13 = scmp.ne.s32.totalorder %s161_s1, %s101_s24  ;;  %p105_p0 = scmp.lt.u32.totalorder %s101_s24, %s161_s1 }
  0x22   :  { %p107_p1 = pnand %p105_p0, %p102_p13 }
  0x24   :  { %110 = shalt.err (!%p107_p1)
}
  0x25   :  { %56 = dma.vmem_to_hbm [thread:$0]  %s51_s21, 256, %s161_s1, [#allocation4], %s116_s16, %s116_s16, %s117_s17  }
  0x26   :  { %113 = dma.done.wait [#allocation4], 256  }
  0x27   :  { %114 = vsyncadd [#allocation4], 4294967040 }
  0x28   :  { %60 = vsyncpa [#allocation3], 1 }
  0x29   :  { %61 = vsyncpa [#allocation4], 1 }

</bundles_post_ra>
